<compile_context>
chip_gen: v7x
topology: tpu7x:2x2x1
jax: 0.10.0
libtpu: 0.0.40
codegen_flags: <defaults>
</compile_context>

<pallas_src>
import functools

import jax
import jax.numpy as jnp
from jax.experimental import pallas as pl
from jax.experimental.pallas import tpu as pltpu

EPS = 1e-5
_DOT_DTYPE = jnp.bfloat16     # MXU operand / im2col-patch dtype (accumulation is f32)
                              # set to jnp.float32 for exact parity with the reference


def _lane_roll(v, shift):
    # Two whole-tensor +/-1 lane shifts instead of six unaligned tap slices.
    # jnp.roll lowers to slice+concatenate (supported for any dtype/shape); swap in
    # pltpu.roll(v, shift, axis=1) to put this on the XLU when the shape meets the
    # rotate op's (sublane % 8, lane % 128) alignment for the deployed channel count.
    return jnp.roll(v, shift, axis=1)


# ------------------------------- fused kernel --------------------------------

def _residual_kernel(*refs, th, w, lane_pad, need_skip, has_halo, dot_dtype):
    """One (batch, row-tile) step of the fused Residual block.

    Channels-first layout, spatial rows*W flattened into lanes:
      x_ref    : (1, Cin, th*w)   current row tile
      xp/xn    : (1, Cin, 8*w)    8-row blocks holding the top / bottom halo rows
                                  (only present in multi-tile mode)
      o_ref    : (1, Cout, th*w)
      patch_ref: (9*half, th*w)   im2col scratch (dot dtype)
    """
    if has_halo:
        (x_ref, xp_ref, xn_ref, ml_ref, mr_ref,
         s1_ref, t1_ref, w1_ref, b1_ref, w2_ref, b2_ref, w3_ref, b3_ref,
         o_ref, patch_ref) = refs
    else:
        (x_ref, ml_ref, mr_ref,
         s1_ref, t1_ref, w1_ref, b1_ref, w2_ref, b2_ref, w3_ref, b3_ref,
         o_ref, patch_ref) = refs

    l = th * w
    half = w1_ref.shape[0]
    f32 = jnp.float32

    def mm(a, b):   # MXU matmul, f32 accumulation (astype is a no-op for bf16 weights)
        return jnp.dot(a.astype(dot_dtype), b.astype(dot_dtype),
                       preferred_element_type=f32)

    def bn1_conv1(v):   # relu(bn1(.)) -> conv1 1x1 (bn2 pre-folded) -> relu
        a = jnp.maximum(v * s1_ref[...] + t1_ref[...], 0.0)
        return jnp.maximum(mm(w1_ref[...], a) + b1_ref[...], 0.0)

    x = x_ref[0].astype(f32)                          # (Cin, l)
    h1 = bn1_conv1(x).astype(dot_dtype)               # (half, l)

    # --- rows just above / below this tile (zero when outside the image) ---
    if has_halo:
        i = pl.program_id(1)
        last = pl.num_programs(1) - 1
        x_top = xp_ref[0][:, (8 - 1) * w:8 * w].astype(f32)   # image row  i*th - 1
        x_bot = xn_ref[0][:, 0:w].astype(f32)                 # image row (i+1)*th
        h_top = jnp.where(i == 0, 0.0, bn1_conv1(x_top)).astype(dot_dtype)
        h_bot = jnp.where(i == last, 0.0, bn1_conv1(x_bot)).astype(dot_dtype)
    else:
        h_top = jnp.zeros((half, w), dot_dtype)
        h_bot = jnp.zeros((half, w), dot_dtype)

    # --- conv2 3x3 (pad=1, bn3 pre-folded) as ONE im2col matmul, built in bf16 ---
    pieces = [h_top, h1, h_bot]
    if lane_pad:
        pieces.append(jnp.zeros((half, lane_pad), dot_dtype))
    e = jnp.concatenate(pieces, axis=1)               # (half, l + 2w [+pad])
    e_l = _lane_roll(e, 1) * ml_ref[...]              # kw = 0 taps, left edge masked
    e_r = _lane_roll(e, -1) * mr_ref[...]             # kw = 2 taps, right edge masked
    for kh in range(3):                               # taps stored straight to scratch
        off = kh * w
        patch_ref[pl.ds((3 * kh + 0) * half, half), :] = e_l[:, off:off + l]
        patch_ref[pl.ds((3 * kh + 1) * half, half), :] = e[:, off:off + l]
        patch_ref[pl.ds((3 * kh + 2) * half, half), :] = e_r[:, off:off + l]
    h2 = jnp.maximum(mm(w2_ref[...], patch_ref[...]) + b2_ref[...], 0.0)   # (half, l)

    # --- conv3 1x1 (+ fused 1x1 skip projection) + residual ---
    if need_skip:
        rhs = jnp.concatenate([h2.astype(dot_dtype), x.astype(dot_dtype)], axis=0)
        out = mm(w3_ref[...], rhs) + b3_ref[...]      # one matmul, K = half + Cin
    else:
        out = mm(w3_ref[...], h2) + b3_ref[...] + x
    o_ref[...] = out[None].astype(o_ref.dtype)


# ----------------------- parameter setup (synthetic) -------------------------

def init_params(key, inp_dim, out_dim, dot_dtype=_DOT_DTYPE):
    half = out_dim // 2
    ks = jax.random.split(key, 20)

    def bn(i, c):
        gamma = 1.0 + 0.1 * jax.random.normal(ks[i], (c,), jnp.float32)
        beta = 0.1 * jax.random.normal(ks[i + 1], (c,), jnp.float32)
        mean = 0.1 * jax.random.normal(ks[i + 2], (c,), jnp.float32)
        var = 1.0 + 0.1 * jnp.abs(jax.random.normal(ks[i + 3], (c,), jnp.float32))
        scale = gamma / jnp.sqrt(var + EPS)
        shift = beta - mean * scale
        return scale, shift

    s1, t1 = bn(0, inp_dim)
    s2, t2 = bn(4, half)
    s3, t3 = bn(8, half)

    # conv weights in PyTorch layout (cout, cin, kh, kw)
    w1 = 0.1 * jax.random.normal(ks[12], (half, inp_dim, 1, 1), jnp.float32)
    b1 = 0.05 * jax.random.normal(ks[13], (half,), jnp.float32)
    w2 = 0.1 * jax.random.normal(ks[14], (half, half, 3, 3), jnp.float32)
    b2 = 0.05 * jax.random.normal(ks[15], (half,), jnp.float32)
    w3 = 0.1 * jax.random.normal(ks[16], (out_dim, half, 1, 1), jnp.float32)
    b3 = 0.05 * jax.random.normal(ks[17], (out_dim,), jnp.float32)
    w_skip = 0.1 * jax.random.normal(ks[18], (out_dim, inp_dim, 1, 1), jnp.float32)
    b_skip = 0.05 * jax.random.normal(ks[19], (out_dim,), jnp.float32)

    need_skip = inp_dim != out_dim

    # fold inference BN into the adjacent convs; store matmul forms (bf16 weights)
    w1f = s2[:, None] * w1[:, :, 0, 0]                             # (half, inp)
    b1f = s2 * b1 + t2
    w2m = jnp.transpose(w2, (0, 2, 3, 1)).reshape(half, 9 * half)  # (co, kh*kw*ci)
    w2f = s3[:, None] * w2m
    b2f = s3 * b2 + t3
    w3m = w3[:, :, 0, 0]                                           # (out, half)
    if need_skip:   # fuse conv3 and the 1x1 skip projection into one matmul
        w3c = jnp.concatenate([w3m, w_skip[:, :, 0, 0]], axis=1)   # (out, half+inp)
        b3c = b3 + b_skip
    else:
        w3c, b3c = w3m, b3

    col = lambda v: v.reshape(-1, 1).astype(jnp.float32)
    return {
        "need_skip": need_skip,
        "s1": col(s1), "t1": col(t1),
        "w1": w1f.astype(dot_dtype), "b1": col(b1f),
        "w2": w2f.astype(dot_dtype), "b2": col(b2f),
        "w3": w3c.astype(dot_dtype), "b3": col(b3c),
    }


# --------------------------------- forward -----------------------------------

def _pick_tile_h(H, W, cin, half, out_dim, budget_bytes=24 << 20):
    """Largest row-tile whose per-step working set fits a conservative VMEM budget.

    Prefers the whole image (no halo inputs -> no redundant HBM reads of x);
    multi-tile mode additionally needs H % 8 == 0 and (8*W) % 128 == 0 so the
    8-row halo blocks stay lane-dense.
    """
    def est_bytes(th):
        l = th * W
        f32_elems = 2 * cin + 2 * out_dim + cin + 2 * half + out_dim   # dma bufs + f32 temps
        b16_elems = 9 * half + 3 * half + half + cin                   # patch + e/e_l/e_r + rhs
        return l * (4 * f32_elems + 2 * b16_elems)

    if est_bytes(H) <= budget_bytes:
        return H
    if H % 8 != 0 or (8 * W) % 128 != 0:
        return H   # TODO(synk): unaligned huge images: no legal multi-tile fallback
    best = 8
    for th in range(8, H, 8):
        if H % th == 0 and est_bytes(th) <= budget_bytes:
            best = th
    return best


def residual_forward(params, x_nchw, *, tile_h=None):
    N, cin, H, W = x_nchw.shape
    half = params["w2"].shape[0]
    out_dim = params["w3"].shape[0]
    need_skip = bool(params["need_skip"])
    dot_dtype = params["w1"].dtype

    if tile_h is None:
        tile_h = _pick_tile_h(H, W, cin, half, out_dim)
    multi_ok = (H % 8 == 0) and ((8 * W) % 128 == 0)
    if tile_h >= H or not multi_ok or H % tile_h != 0 or tile_h % 8 != 0:
        tile_h = H                      # single whole-image tile, no halo inputs
    has_halo = tile_h < H
    n_tiles = H // tile_h
    hb = tile_h // 8 if has_halo else 1
    l = tile_h * W
    lane_pad = (-(l + 2 * W)) % 128
    Lp = l + 2 * W + lane_pad

    # grid-invariant 3x3 kw edge masks, hoisted out of the kernel (resident in VMEM)
    colw = jnp.arange(Lp, dtype=jnp.int32) % W
    mask_l = (colw != 0).astype(dot_dtype).reshape(1, Lp)
    mask_r = (colw != W - 1).astype(dot_dtype).reshape(1, Lp)

    x_flat = x_nchw.reshape(N, cin, H * W)   # free reshape, no transpose, no pad

    def _full(a):                            # whole small array, resident across steps
        return pl.BlockSpec(a.shape, lambda n, i, _nd=a.ndim: (0,) * _nd)

    kernel = functools.partial(
        _residual_kernel, th=tile_h, w=W, lane_pad=lane_pad,
        need_skip=need_skip, has_halo=has_halo, dot_dtype=dot_dtype)

    in_specs = [pl.BlockSpec((1, cin, l), lambda n, i: (n, 0, i))]
    inputs = [x_flat]
    if has_halo:
        # 8-row blocks containing image rows i*tile_h - 1 / (i+1)*tile_h (clamped at
        # the image edges; out-of-image halo rows are zeroed in-kernel).
        in_specs += [
            pl.BlockSpec((1, cin, 8 * W),
                         lambda n, i: (n, 0, jnp.maximum(i * hb - 1, 0))),
            pl.BlockSpec((1, cin, 8 * W),
                         lambda n, i: (n, 0, jnp.minimum((i + 1) * hb, H // 8 - 1))),
        ]
        inputs += [x_flat, x_flat]
    small = [mask_l, mask_r,
             params["s1"], params["t1"], params["w1"], params["b1"],
             params["w2"], params["b2"], params["w3"], params["b3"]]
    in_specs += [_full(a) for a in small]
    inputs += small

    out_flat = pl.pallas_call(
        kernel,
        out_shape=jax.ShapeDtypeStruct((N, out_dim, H * W), x_nchw.dtype),
        grid=(N, n_tiles),
        in_specs=in_specs,
        out_specs=pl.BlockSpec((1, out_dim, l), lambda n, i: (n, 0, i)),
        scratch_shapes=[pltpu.VMEM((9 * half, l), dot_dtype)],
        compiler_params=pltpu.CompilerParams(
            dimension_semantics=("parallel", "parallel"),
            vmem_limit_bytes=64 * 1024 * 1024),
    )(*inputs)

    return out_flat.reshape(N, out_dim, H, W)


# ----------------------- pure-JAX reference (for checking) -------------------

def _reference(params, x_nchw):
    f32 = jnp.float32
    N, cin, H, W = x_nchw.shape
    half = params["w2"].shape[0]
    c = lambda v: v.reshape(1, -1, 1, 1)
    w1 = params["w1"].astype(f32)
    w2 = params["w2"].astype(f32)
    w3 = params["w3"].astype(f32)
    a = jnp.maximum(x_nchw * c(params["s1"]) + c(params["t1"]), 0.0)
    h1 = jnp.maximum(jnp.einsum("oc,nchw->nohw", w1, a) + c(params["b1"]), 0.0)
    h1p = jnp.pad(h1, ((0, 0), (0, 0), (1, 1), (1, 1)))
    w2r = w2.reshape(half, 3, 3, half)                 # (co, kh, kw, ci)
    h2 = c(params["b2"])
    for kh in range(3):
        for kw in range(3):
            h2 = h2 + jnp.einsum("oc,nchw->nohw", w2r[:, kh, kw, :],
                                 h1p[:, :, kh:kh + H, kw:kw + W])
    h2 = jnp.maximum(h2, 0.0)
    out = jnp.einsum("oc,nchw->nohw", w3[:, :half], h2) + c(params["b3"])
    if params["need_skip"]:
        out = out + jnp.einsum("oc,nchw->nohw", w3[:, half:], x_nchw)
    else:
        out = out + x_nchw
    return out


if __name__ == "__main__":
    key = jax.random.PRNGKey(0)
    kp1, kp2, kx1, kx2 = jax.random.split(key, 4)

    # 1) inp_dim != out_dim (projection skip), auto tiling -> single tile, no halo
    p1 = init_params(kp1, 16, 32)
    x1 = jax.random.normal(kx1, (2, 16, 16, 16), jnp.float32)     # NCHW like PyTorch
    o1 = residual_forward(p1, x1)
    jax.block_until_ready(o1)
    assert o1.shape == (2, 32, 16, 16), o1.shape
    err1 = float(jnp.max(jnp.abs(o1 - _reference(p1, x1))))
    assert err1 < 5e-2, f"projection-skip case: max abs err {err1}"

    # 2) same weights/input, forced multi-row-tile -> exercises the 3x3 halo path
    o2 = residual_forward(p1, x1, tile_h=8)
    jax.block_until_ready(o2)
    err2 = float(jnp.max(jnp.abs(o2 - _reference(p1, x1))))
    assert err2 < 5e-2, f"halo case: max abs err {err2}"

    # 3) inp_dim == out_dim (identity skip)
    p3 = init_params(kp2, 32, 32)
    x3 = jax.random.normal(kx2, (2, 32, 16, 16), jnp.float32)
    o3 = residual_forward(p3, x3)
    jax.block_until_ready(o3)
    err3 = float(jnp.max(jnp.abs(o3 - _reference(p3, x3))))
    assert err3 < 5e-2, f"identity-skip case: max abs err {err3}"

    print("KERNEL_OK")
</pallas_src>

<mosaic_0001>
module attributes {stable_mosaic.version = 11 : i64} {
  func.func @_residual_kernel(%arg0: i32, %arg1: i32, %arg2: memref<1x16x256xf32, #tpu.memory_space<vmem>>, %arg3: memref<1x384xbf16, #tpu.memory_space<vmem>>, %arg4: memref<1x384xbf16, #tpu.memory_space<vmem>>, %arg5: memref<16x1xf32, #tpu.memory_space<vmem>>, %arg6: memref<16x1xf32, #tpu.memory_space<vmem>>, %arg7: memref<16x16xbf16, #tpu.memory_space<vmem>>, %arg8: memref<16x1xf32, #tpu.memory_space<vmem>>, %arg9: memref<16x144xbf16, #tpu.memory_space<vmem>>, %arg10: memref<16x1xf32, #tpu.memory_space<vmem>>, %arg11: memref<32x32xbf16, #tpu.memory_space<vmem>>, %arg12: memref<32x1xf32, #tpu.memory_space<vmem>>, %arg13: memref<1x32x256xf32, #tpu.memory_space<vmem>>, %arg14: memref<144x256xbf16, #tpu.memory_space<vmem>>) attributes {dimension_semantics = [#tpu.dimension_semantics<parallel>, #tpu.dimension_semantics<parallel>], iteration_bounds = array<i64: 2, 1>, scalar_prefetch = 0 : i64, scratch_operands = 1 : i64, tpu.core_type = #tpu.core_type<tc>, window_params = [{transform_indices = @transform_0, window_bounds = array<i64: 1, 16, 256>}, {pipeline_mode = #tpu.pipeline_mode<synchronous>, transform_indices = @transform_1, window_bounds = array<i64: 1, 384>}, {pipeline_mode = #tpu.pipeline_mode<synchronous>, transform_indices = @transform_2, window_bounds = array<i64: 1, 384>}, {pipeline_mode = #tpu.pipeline_mode<synchronous>, transform_indices = @transform_3, window_bounds = array<i64: 16, 1>}, {pipeline_mode = #tpu.pipeline_mode<synchronous>, transform_indices = @transform_4, window_bounds = array<i64: 16, 1>}, {pipeline_mode = #tpu.pipeline_mode<synchronous>, transform_indices = @transform_5, window_bounds = array<i64: 16, 16>}, {pipeline_mode = #tpu.pipeline_mode<synchronous>, transform_indices = @transform_6, window_bounds = array<i64: 16, 1>}, {pipeline_mode = #tpu.pipeline_mode<synchronous>, transform_indices = @transform_7, window_bounds = array<i64: 16, 144>}, {pipeline_mode = #tpu.pipeline_mode<synchronous>, transform_indices = @transform_8, window_bounds = array<i64: 16, 1>}, {pipeline_mode = #tpu.pipeline_mode<synchronous>, transform_indices = @transform_9, window_bounds = array<i64: 32, 32>}, {pipeline_mode = #tpu.pipeline_mode<synchronous>, transform_indices = @transform_10, window_bounds = array<i64: 32, 1>}, {transform_indices = @transform_11, window_bounds = array<i64: 1, 32, 256>}]} {
    %c0 = arith.constant 0 : index
    %c0_0 = arith.constant 0 : index
    %c0_1 = arith.constant 0 : index
    %0 = vector.load %arg2[%c0, %c0_0, %c0_1] : memref<1x16x256xf32, #tpu.memory_space<vmem>>, vector<1x16x256xf32>
    %1 = vector.shape_cast %0 : vector<1x16x256xf32> to vector<16x256xf32>
    %c0_2 = arith.constant 0 : index
    %c0_3 = arith.constant 0 : index
    %2 = vector.load %arg5[%c0_2, %c0_3] : memref<16x1xf32, #tpu.memory_space<vmem>>, vector<16x1xf32>
    %3 = vector.broadcast %2 : vector<16x1xf32> to vector<16x256xf32>
    %4 = arith.mulf %1, %3 : vector<16x256xf32>
    %c0_4 = arith.constant 0 : index
    %c0_5 = arith.constant 0 : index
    %5 = vector.load %arg6[%c0_4, %c0_5] : memref<16x1xf32, #tpu.memory_space<vmem>>, vector<16x1xf32>
    %6 = vector.broadcast %5 : vector<16x1xf32> to vector<16x256xf32>
    %7 = arith.addf %4, %6 : vector<16x256xf32>
    %cst = arith.constant 0.000000e+00 : f32
    %8 = vector.broadcast %cst : f32 to vector<16x256xf32>
    %9 = arith.maximumf %7, %8 : vector<16x256xf32>
    %c0_6 = arith.constant 0 : index
    %c0_7 = arith.constant 0 : index
    %10 = vector.load %arg7[%c0_6, %c0_7] : memref<16x16xbf16, #tpu.memory_space<vmem>>, vector<16x16xbf16>
    %11 = arith.truncf %9 : vector<16x256xf32> to vector<16x256xbf16>
    %cst_8 = arith.constant dense<0.000000e+00> : vector<16x256xf32>
    %12 = tpu.matmul %10, %11, %cst_8 {dimension_numbers = #tpu.dot_dimension_numbers<[1], [0], [0], [1], [0, 0, 1, 1], [], []>} : vector<16x16xbf16>, vector<16x256xbf16>, vector<16x256xf32> -> vector<16x256xf32>
    %c0_9 = arith.constant 0 : index
    %c0_10 = arith.constant 0 : index
    %13 = vector.load %arg8[%c0_9, %c0_10] : memref<16x1xf32, #tpu.memory_space<vmem>>, vector<16x1xf32>
    %14 = vector.broadcast %13 : vector<16x1xf32> to vector<16x256xf32>
    %15 = arith.addf %12, %14 : vector<16x256xf32>
    %cst_11 = arith.constant 0.000000e+00 : f32
    %16 = vector.broadcast %cst_11 : f32 to vector<16x256xf32>
    %17 = arith.maximumf %15, %16 : vector<16x256xf32>
    %18 = arith.truncf %17 : vector<16x256xf32> to vector<16x256xbf16>
    %cst_12 = arith.constant 0.000000e+00 : bf16
    %19 = vector.broadcast %cst_12 : bf16 to vector<16x16xbf16>
    %cst_13 = arith.constant 0.000000e+00 : bf16
    %20 = vector.broadcast %cst_13 : bf16 to vector<16x16xbf16>
    %cst_14 = arith.constant 0.000000e+00 : bf16
    %21 = vector.broadcast %cst_14 : bf16 to vector<16x96xbf16>
    %22 = tpu.concatenate %19, %18, %20, %21 in 1 : vector<16x16xbf16>, vector<16x256xbf16>, vector<16x16xbf16>, vector<16x96xbf16> -> vector<16x384xbf16>
    %23 = vector.extract_strided_slice %22 {offsets = [0, 383], sizes = [16, 1], strides = [1, 1]} : vector<16x384xbf16> to vector<16x1xbf16>
    %24 = vector.extract_strided_slice %22 {offsets = [0, 0], sizes = [16, 383], strides = [1, 1]} : vector<16x384xbf16> to vector<16x383xbf16>
    %25 = tpu.concatenate %23, %24 in 1 : vector<16x1xbf16>, vector<16x383xbf16> -> vector<16x384xbf16>
    %c0_15 = arith.constant 0 : index
    %c0_16 = arith.constant 0 : index
    %26 = vector.load %arg3[%c0_15, %c0_16] : memref<1x384xbf16, #tpu.memory_space<vmem>>, vector<1x384xbf16>
    %27 = vector.broadcast %26 : vector<1x384xbf16> to vector<16x384xbf16>
    %28 = arith.mulf %25, %27 : vector<16x384xbf16>
    %29 = vector.extract_strided_slice %22 {offsets = [0, 1], sizes = [16, 383], strides = [1, 1]} : vector<16x384xbf16> to vector<16x383xbf16>
    %30 = vector.extract_strided_slice %22 {offsets = [0, 0], sizes = [16, 1], strides = [1, 1]} : vector<16x384xbf16> to vector<16x1xbf16>
    %31 = tpu.concatenate %29, %30 in 1 : vector<16x383xbf16>, vector<16x1xbf16> -> vector<16x384xbf16>
    %c0_17 = arith.constant 0 : index
    %c0_18 = arith.constant 0 : index
    %32 = vector.load %arg4[%c0_17, %c0_18] : memref<1x384xbf16, #tpu.memory_space<vmem>>, vector<1x384xbf16>
    %33 = vector.broadcast %32 : vector<1x384xbf16> to vector<16x384xbf16>
    %34 = arith.mulf %31, %33 : vector<16x384xbf16>
    %35 = vector.extract_strided_slice %28 {offsets = [0, 0], sizes = [16, 256], strides = [1, 1]} : vector<16x384xbf16> to vector<16x256xbf16>
    %c0_19 = arith.constant 0 : index
    %c0_20 = arith.constant 0 : index
    %36 = vector.load %arg14[%c0_19, %c0_20] : memref<144x256xbf16, #tpu.memory_space<vmem>>, vector<16x256xbf16>
    tpu.vector_store %arg14[%c0_19, %c0_20], %35 {strides = array<i32>} : memref<144x256xbf16, #tpu.memory_space<vmem>>, vector<16x256xbf16>,
    %37 = vector.extract_strided_slice %22 {offsets = [0, 0], sizes = [16, 256], strides = [1, 1]} : vector<16x384xbf16> to vector<16x256xbf16>
    %c16 = arith.constant 16 : index
    %c0_21 = arith.constant 0 : index
    %38 = vector.load %arg14[%c16, %c0_21] : memref<144x256xbf16, #tpu.memory_space<vmem>>, vector<16x256xbf16>
    tpu.vector_store %arg14[%c16, %c0_21], %37 {strides = array<i32>} : memref<144x256xbf16, #tpu.memory_space<vmem>>, vector<16x256xbf16>,
    %39 = vector.extract_strided_slice %34 {offsets = [0, 0], sizes = [16, 256], strides = [1, 1]} : vector<16x384xbf16> to vector<16x256xbf16>
    %c32 = arith.constant 32 : index
    %c0_22 = arith.constant 0 : index
    %40 = vector.load %arg14[%c32, %c0_22] : memref<144x256xbf16, #tpu.memory_space<vmem>>, vector<16x256xbf16>
    tpu.vector_store %arg14[%c32, %c0_22], %39 {strides = array<i32>} : memref<144x256xbf16, #tpu.memory_space<vmem>>, vector<16x256xbf16>,
    %41 = vector.extract_strided_slice %28 {offsets = [0, 16], sizes = [16, 256], strides = [1, 1]} : vector<16x384xbf16> to vector<16x256xbf16>
    %c48 = arith.constant 48 : index
    %c0_23 = arith.constant 0 : index
    %42 = vector.load %arg14[%c48, %c0_23] : memref<144x256xbf16, #tpu.memory_space<vmem>>, vector<16x256xbf16>
    tpu.vector_store %arg14[%c48, %c0_23], %41 {strides = array<i32>} : memref<144x256xbf16, #tpu.memory_space<vmem>>, vector<16x256xbf16>,
    %43 = vector.extract_strided_slice %22 {offsets = [0, 16], sizes = [16, 256], strides = [1, 1]} : vector<16x384xbf16> to vector<16x256xbf16>
    %c64 = arith.constant 64 : index
    %c0_24 = arith.constant 0 : index
    %44 = vector.load %arg14[%c64, %c0_24] : memref<144x256xbf16, #tpu.memory_space<vmem>>, vector<16x256xbf16>
    tpu.vector_store %arg14[%c64, %c0_24], %43 {strides = array<i32>} : memref<144x256xbf16, #tpu.memory_space<vmem>>, vector<16x256xbf16>,
    %45 = vector.extract_strided_slice %34 {offsets = [0, 16], sizes = [16, 256], strides = [1, 1]} : vector<16x384xbf16> to vector<16x256xbf16>
    %c80 = arith.constant 80 : index
    %c0_25 = arith.constant 0 : index
    %46 = vector.load %arg14[%c80, %c0_25] : memref<144x256xbf16, #tpu.memory_space<vmem>>, vector<16x256xbf16>
    tpu.vector_store %arg14[%c80, %c0_25], %45 {strides = array<i32>} : memref<144x256xbf16, #tpu.memory_space<vmem>>, vector<16x256xbf16>,
    %47 = vector.extract_strided_slice %28 {offsets = [0, 32], sizes = [16, 256], strides = [1, 1]} : vector<16x384xbf16> to vector<16x256xbf16>
    %c96 = arith.constant 96 : index
    %c0_26 = arith.constant 0 : index
    %48 = vector.load %arg14[%c96, %c0_26] : memref<144x256xbf16, #tpu.memory_space<vmem>>, vector<16x256xbf16>
    tpu.vector_store %arg14[%c96, %c0_26], %47 {strides = array<i32>} : memref<144x256xbf16, #tpu.memory_space<vmem>>, vector<16x256xbf16>,
    %49 = vector.extract_strided_slice %22 {offsets = [0, 32], sizes = [16, 256], strides = [1, 1]} : vector<16x384xbf16> to vector<16x256xbf16>
    %c112 = arith.constant 112 : index
    %c0_27 = arith.constant 0 : index
    %50 = vector.load %arg14[%c112, %c0_27] : memref<144x256xbf16, #tpu.memory_space<vmem>>, vector<16x256xbf16>
    tpu.vector_store %arg14[%c112, %c0_27], %49 {strides = array<i32>} : memref<144x256xbf16, #tpu.memory_space<vmem>>, vector<16x256xbf16>,
    %51 = vector.extract_strided_slice %34 {offsets = [0, 32], sizes = [16, 256], strides = [1, 1]} : vector<16x384xbf16> to vector<16x256xbf16>
    %c128 = arith.constant 128 : index
    %c0_28 = arith.constant 0 : index
    %52 = vector.load %arg14[%c128, %c0_28] : memref<144x256xbf16, #tpu.memory_space<vmem>>, vector<16x256xbf16>
    tpu.vector_store %arg14[%c128, %c0_28], %51 {strides = array<i32>} : memref<144x256xbf16, #tpu.memory_space<vmem>>, vector<16x256xbf16>,
    %c0_29 = arith.constant 0 : index
    %c0_30 = arith.constant 0 : index
    %53 = vector.load %arg9[%c0_29, %c0_30] : memref<16x144xbf16, #tpu.memory_space<vmem>>, vector<16x144xbf16>
    %c0_31 = arith.constant 0 : index
    %c0_32 = arith.constant 0 : index
    %54 = vector.load %arg14[%c0_31, %c0_32] : memref<144x256xbf16, #tpu.memory_space<vmem>>, vector<144x256xbf16>
    %cst_33 = arith.constant dense<0.000000e+00> : vector<16x256xf32>
    %55 = tpu.matmul %53, %54, %cst_33 {dimension_numbers = #tpu.dot_dimension_numbers<[1], [0], [0], [1], [0, 0, 1, 1], [], []>} : vector<16x144xbf16>, vector<144x256xbf16>, vector<16x256xf32> -> vector<16x256xf32>
    %c0_34 = arith.constant 0 : index
    %c0_35 = arith.constant 0 : index
    %56 = vector.load %arg10[%c0_34, %c0_35] : memref<16x1xf32, #tpu.memory_space<vmem>>, vector<16x1xf32>
    %57 = vector.broadcast %56 : vector<16x1xf32> to vector<16x256xf32>
    %58 = arith.addf %55, %57 : vector<16x256xf32>
    %cst_36 = arith.constant 0.000000e+00 : f32
    %59 = vector.broadcast %cst_36 : f32 to vector<16x256xf32>
    %60 = arith.maximumf %58, %59 : vector<16x256xf32>
    %61 = arith.truncf %60 : vector<16x256xf32> to vector<16x256xbf16>
    %62 = arith.truncf %1 : vector<16x256xf32> to vector<16x256xbf16>
    %63 = tpu.concatenate %61, %62 in 0 : vector<16x256xbf16>, vector<16x256xbf16> -> vector<32x256xbf16>
    %c0_37 = arith.constant 0 : index
    %c0_38 = arith.constant 0 : index
    %64 = vector.load %arg11[%c0_37, %c0_38] : memref<32x32xbf16, #tpu.memory_space<vmem>>, vector<32x32xbf16>
    %cst_39 = arith.constant dense<0.000000e+00> : vector<32x256xf32>
    %65 = tpu.matmul %64, %63, %cst_39 {dimension_numbers = #tpu.dot_dimension_numbers<[1], [0], [0], [1], [0, 0, 1, 1], [], []>} : vector<32x32xbf16>, vector<32x256xbf16>, vector<32x256xf32> -> vector<32x256xf32>
    %c0_40 = arith.constant 0 : index
    %c0_41 = arith.constant 0 : index
    %66 = vector.load %arg12[%c0_40, %c0_41] : memref<32x1xf32, #tpu.memory_space<vmem>>, vector<32x1xf32>
    %67 = vector.broadcast %66 : vector<32x1xf32> to vector<32x256xf32>
    %68 = arith.addf %65, %67 : vector<32x256xf32>
    %69 = vector.shape_cast %68 : vector<32x256xf32> to vector<1x32x256xf32>
    %c0_42 = arith.constant 0 : index
    %c0_43 = arith.constant 0 : index
    %c0_44 = arith.constant 0 : index
    %70 = vector.load %arg13[%c0_42, %c0_43, %c0_44] : memref<1x32x256xf32, #tpu.memory_space<vmem>>, vector<1x32x256xf32>
    tpu.vector_store %arg13[%c0_42, %c0_43, %c0_44], %69 {strides = array<i32>} : memref<1x32x256xf32, #tpu.memory_space<vmem>>, vector<1x32x256xf32>,
    return
  }
  func.func @transform_0(%arg0: i32, %arg1: i32) -> (i32, i32, i32) {
    %c0_i32 = arith.constant 0 : i32
    %c0_i32_0 = arith.constant 0 : i32
    return %arg0, %c0_i32, %arg1 : i32, i32, i32
  }
  func.func @transform_1(%arg0: i32, %arg1: i32) -> (i32, i32) {
    %c0_i32 = arith.constant 0 : i32
    %c0_i32_0 = arith.constant 0 : i32
    %c0_i32_1 = arith.constant 0 : i32
    return %c0_i32, %c0_i32_0 : i32, i32
  }
  func.func @transform_2(%arg0: i32, %arg1: i32) -> (i32, i32) {
    %c0_i32 = arith.constant 0 : i32
    %c0_i32_0 = arith.constant 0 : i32
    %c0_i32_1 = arith.constant 0 : i32
    return %c0_i32, %c0_i32_0 : i32, i32
  }
  func.func @transform_3(%arg0: i32, %arg1: i32) -> (i32, i32) {
    %c0_i32 = arith.constant 0 : i32
    %c0_i32_0 = arith.constant 0 : i32
    %c0_i32_1 = arith.constant 0 : i32
    return %c0_i32, %c0_i32_0 : i32, i32
  }
  func.func @transform_4(%arg0: i32, %arg1: i32) -> (i32, i32) {
    %c0_i32 = arith.constant 0 : i32
    %c0_i32_0 = arith.constant 0 : i32
    %c0_i32_1 = arith.constant 0 : i32
    return %c0_i32, %c0_i32_0 : i32, i32
  }
  func.func @transform_5(%arg0: i32, %arg1: i32) -> (i32, i32) {
    %c0_i32 = arith.constant 0 : i32
    %c0_i32_0 = arith.constant 0 : i32
    %c0_i32_1 = arith.constant 0 : i32
    return %c0_i32, %c0_i32_0 : i32, i32
  }
  func.func @transform_6(%arg0: i32, %arg1: i32) -> (i32, i32) {
    %c0_i32 = arith.constant 0 : i32
    %c0_i32_0 = arith.constant 0 : i32
    %c0_i32_1 = arith.constant 0 : i32
    return %c0_i32, %c0_i32_0 : i32, i32
  }
  func.func @transform_7(%arg0: i32, %arg1: i32) -> (i32, i32) {
    %c0_i32 = arith.constant 0 : i32
    %c0_i32_0 = arith.constant 0 : i32
    %c0_i32_1 = arith.constant 0 : i32
    return %c0_i32, %c0_i32_0 : i32, i32
  }
  func.func @transform_8(%arg0: i32, %arg1: i32) -> (i32, i32) {
    %c0_i32 = arith.constant 0 : i32
    %c0_i32_0 = arith.constant 0 : i32
    %c0_i32_1 = arith.constant 0 : i32
    return %c0_i32, %c0_i32_0 : i32, i32
  }
  func.func @transform_9(%arg0: i32, %arg1: i32) -> (i32, i32) {
    %c0_i32 = arith.constant 0 : i32
    %c0_i32_0 = arith.constant 0 : i32
    %c0_i32_1 = arith.constant 0 : i32
    return %c0_i32, %c0_i32_0 : i32, i32
  }
  func.func @transform_10(%arg0: i32, %arg1: i32) -> (i32, i32) {
    %c0_i32 = arith.constant 0 : i32
    %c0_i32_0 = arith.constant 0 : i32
    %c0_i32_1 = arith.constant 0 : i32
    return %c0_i32, %c0_i32_0 : i32, i32
  }
  func.func @transform_11(%arg0: i32, %arg1: i32) -> (i32, i32, i32) {
    %c0_i32 = arith.constant 0 : i32
    %c0_i32_0 = arith.constant 0 : i32
    return %arg0, %c0_i32, %arg1 : i32, i32, i32
  }
}

</mosaic_0001>

<bundles_post_ra>
// kernel: tpu_custom_call.1
= control target key start
LH: loop header
LB: loop body
LE: loop exit
PB: predicated region body
PF: predicated region fallthrough
CT: control target
= control target key end

     0   :  { %s2565_s0 = inlined_call_operand.hbm [shape: f32[2,16,256], index: 0, kind: input, shape index: {}]   ;;  %s2566_s1 = inlined_call_operand.hbm [shape: bf16[1,384], index: 1, kind: input, shape index: {}]   ;;  %s2567_s2 = inlined_call_operand.hbm [shape: bf16[1,384], index: 2, kind: input, shape index: {}]   ;;  %s2568_s3 = inlined_call_operand.hbm [shape: f32[16,1], index: 3, kind: input, shape index: {}]   ;;  %s2569_s4 = inlined_call_operand.hbm [shape: f32[16,1], index: 4, kind: input, shape index: {}]   ;;  %s2570_s5 = inlined_call_operand.hbm [shape: bf16[16,16], index: 5, kind: input, shape index: {}]   ;;  %s2571_s6 = inlined_call_operand.hbm [shape: f32[16,1], index: 6, kind: input, shape index: {}]   ;;  %s2572_s7 = inlined_call_operand.hbm [shape: bf16[16,144], index: 7, kind: input, shape index: {}]   ;;  %s2573_s8 = inlined_call_operand.hbm [shape: f32[16,1], index: 8, kind: input, shape index: {}]   ;;  %s2574_s9 = inlined_call_operand.hbm [shape: bf16[32,32], index: 9, kind: input, shape index: {}]   ;;  %s2575_s10 = inlined_call_operand.hbm [shape: f32[32,1], index: 10, kind: input, shape index: {}]   ;;  %s2576_s11 = inlined_call_operand.hbm [shape: f32[2,32,256], index: 11, kind: output, shape index: {}]  }
   0x1   :  { %2591 = sst [smem:[#allocation32_spill]] %s2565_s0 }
   0x2   :  { %2592 = sst [smem:[#allocation33_spill]] %s2566_s1 }
   0x3   :  { %2593 = sst [smem:[#allocation34_spill]] %s2568_s3 }
   0x4   :  { %2594 = sst [smem:[#allocation35_spill]] %s2570_s5 }
   0x5   :  { %2595 = sst [smem:[#allocation36_spill]] %s2576_s11 }
   0x6   :  { %16 = vsyncpa [#allocation4], 0 }
   0x7   :  { %18 = vsyncpa [#allocation4 + $0x1], 0 }
   0x8   :  { %19 = vsyncpa [#allocation7], 0 }
   0x9   :  { %20 = vsyncpa [#allocation10], 0 }
   0xa   :  { %21 = vsyncpa [#allocation13], 0 }
   0xb   :  { %22 = vsyncpa [#allocation16], 0 }
   0xc   :  { %23 = vsyncpa [#allocation19], 0 }
   0xd   :  { %24 = vsyncpa [#allocation5], 0 }
   0xe   :  { %26 = vsyncpa [#allocation5 + $0x1], 0  ;;  %s2049_s17 = smov 0   ;;  %s2051_s18 = smov 0  }
   0xf   :  { %s2053_s19 = smov 0   ;;  %s2055_s20 = smov 0  }
  0x10   :  { %s2057_s21 = smov 0   ;;  %s2059_s22 = smov 0  }
  0x11 LB: > { %2596 = sst [smem:[#allocation29_spill]] %s1953_s20  ;;  %s2577_s23 = sadd.s32 4294967295, %s1961_s22   ;;  %s1961_s22 = sphi %s2059_s22, %s32_s22   ;;  %s1957_s21 = sphi %s2057_s21, %s2630_s21   ;;  %s1953_s20 = sphi %s2055_s20, %s2629_s20   ;;  %s1949_s19 = sphi %s2053_s19, %s2628_s19   ;;  %s1945_s18 = sphi %s2051_s18, %s2627_s18   ;;  %s1941_s17 = sphi %s2049_s17, %s2626_s17  }
  0x12   : > { %p1316_p0 = scmp.ge.s32.totalorder %s1961_s22, 1  ;;  %p2083_p1 = scmp.eq.s32.totalorder %s2577_s23, 0 }
  0x13   : > { %p315_p2 = scmp.lt.s32.totalorder %s1961_s22, 3  ;;  %s1963_s26 = smov [#allocation6]  }
  0x14   : > { %s2597_s24 = scalar_select %p2083_p1, 1, 0 }
  0x15   : > { %p2088_p3 = pnand %p1316_p0, %p315_p2  ;;  %s328_s27 = sshll.u32 %s1963_s26, 4  ;;  %s329_s27 = int_to_ptr.vmem [resolvable:$true] %s328_s27 }
  0x16   : > { %2598 = sst [smem:[#allocation30_spill]] %s2597_s24  ;;  %s1964_s28 = smov [#allocation9]  }
  0x17   : > { %s2599_s25 = scalar_select %p2088_p3, 1, 0 }
  0x18   : > { %p1408_p5 = pneg %p2088_p3  ;;  %s349_s29 = sshll.u32 %s1964_s28, 4  ;;  %s2101_s29 = int_to_ptr.vmem [resolvable:$true] %s349_s29 }
  0x19   : > { %2600 = sst [smem:[#allocation31_spill]] %s2599_s25  ;;  %s1965_s12 = smov [#allocation12]  }
  0x1a   : > { %p2097_p6 = pnand %p1408_p5, %p2083_p1  ;;  %s2103_s13 = sshll.u32 %s1965_s12, 4  ;;  %s376_s13 = int_to_ptr.vmem [resolvable:$true] %s2103_s13 }
  0x1b   : > { %s2602_s1 = sld [smem:[#allocation33_spill]] }
  0x1c   : > { %p2113_p8 = pneg %p2097_p6 }
  0x21   : > { %s1549_s16 = scalar_lea.hbm %s2602_s1, 48 }
  0x22   : > { %p1550_p7 = scmp.ne.s32.totalorder %s2602_s1, %s1549_s16  ;;  %p1556_p11 = scmp.lt.u32.totalorder %s1549_s16, %s2602_s1 }
  0x24   : > { %p1552_p9 = pnand %p2113_p8, %p1550_p7 }
  0x26   : > { %p1553_p10 = pneg %p1552_p9 }
  0x28   : > { %p1558_p12 = pnand %p1556_p11, %p1553_p10 }
  0x2a   : > { %1561 = shalt.err (!%p1558_p12)
}
  0x2b   : > { %s1562_s14 = scalar_lea.vmem %s329_s27, 48  ;;  %s1569_s23 = scalar_lea.vmem %s329_s27, 64 }
  0x2c   : > { %p1563_p13 = scmp.ne.s32.totalorder %s329_s27, %s1562_s14  ;;  %p1570_p5 = scmp.lt.s32.totalorder %s329_s27, %s329_s27 }
  0x2d   : > { %p1571_p4 = scmp.lt.s32.totalorder %s1569_s23, %s1562_s14 }
  0x2e   : > { %p1565_p0 = pnand %p1563_p13, %p2113_p8 }
  0x2f   : > { %p1572_p3 = por %p1571_p4, %p1570_p5 }
  0x30   : > { %p1566_p2 = pneg %p1565_p0 }
  0x32   : > { %p1573_p1 = pnand %p1572_p3, %p1566_p2 }
  0x34   : > { %1576 = shalt.err (!%p1573_p1)
}
  0x35   : > { %1411 = dma.hbm_to_vmem [thread:$0]  (!%p2097_p6), %s2602_s1, 48, %s329_s27, [#allocation7]  }
  0x36   : > { %s2604_s3 = sld [smem:[#allocation34_spill]] }
  0x3c   : > { %s1577_s12 = scalar_lea.hbm %s2604_s3, 256 }
  0x3d   : > { %p1578_p7 = scmp.ne.s32.totalorder %s2604_s3, %s1577_s12  ;;  %p1584_p1 = scmp.lt.u32.totalorder %s1577_s12, %s2604_s3 }
  0x3f   : > { %p1580_p9 = pnand %p1578_p7, %p2113_p8 }
  0x41   : > { %p1581_p4 = pneg %p1580_p9 }
  0x43   : > { %p1586_p3 = pnand %p1584_p1, %p1581_p4 }
  0x45   : > { %1589 = shalt.err (!%p1586_p3)
}
  0x46   : > { %s1590_s27 = scalar_lea.vmem %s2101_s29, 256  ;;  %p1598_p13 = scmp.lt.s32.totalorder %s2101_s29, %s2101_s29 }
  0x47   : > { %p1591_p10 = scmp.ne.s32.totalorder %s2101_s29, %s1590_s27  ;;  %p1599_p0 = scmp.lt.s32.totalorder %s1590_s27, %s1590_s27 }
  0x49   : > { %p1593_p11 = pnand %p1591_p10, %p2113_p8  ;;  %p1600_p2 = por %p1599_p0, %p1598_p13 }
  0x4b   : > { %p1594_p12 = pneg %p1593_p11 }
  0x4d   : > { %p1601_p5 = pnand %p1600_p2, %p1594_p12 }
  0x4f   : > { %1604 = shalt.err (!%p1601_p5)
}
  0x50   : > { %s2583_s20 = smov 128   ;;  %s2585_s25 = smov 8  }
  0x51   : > { %1417 = dma.hbm_to_vmem [thread:$0]  (!%p2097_p6), %s2604_s3, 256, %s2101_s29, [#allocation10], %s2583_s20, %s2583_s20, %s2585_s25  }
  0x52   : > { %s2605_s5 = sld [smem:[#allocation35_spill]] }
  0x58   : > { %s1605_s12 = scalar_lea.hbm %s2605_s5, 128 }
  0x59   : > { %p1606_p7 = scmp.ne.s32.totalorder %s2605_s5, %s1605_s12  ;;  %p1612_p1 = scmp.lt.u32.totalorder %s1605_s12, %s2605_s5 }
  0x5b   : > { %p1608_p9 = pnand %p1606_p7, %p2113_p8 }
  0x5d   : > { %p1609_p4 = pneg %p1608_p9 }
  0x5f   : > { %p1614_p3 = pnand %p1612_p1, %p1609_p4 }
  0x61   : > { %1617 = shalt.err (!%p1614_p3)
}
  0x62   : > { %s1618_s15 = scalar_lea.vmem %s376_s13, 128  ;;  %p1626_p13 = scmp.lt.s32.totalorder %s376_s13, %s376_s13 }
  0x63   : > { %p1619_p10 = scmp.ne.s32.totalorder %s376_s13, %s1618_s15  ;;  %p1627_p0 = scmp.lt.s32.totalorder %s1618_s15, %s1618_s15 }
  0x65   : > { %p1621_p11 = pnand %p1619_p10, %p2113_p8  ;;  %p1628_p2 = por %p1627_p0, %p1626_p13 }
  0x67   : > { %p1622_p12 = pneg %p1621_p11 }
  0x69   : > { %p1629_p5 = pnand %p1628_p2, %p1622_p12 }
  0x6b   : > { %1632 = shalt.err (!%p1629_p5)
}
  0x6c   : > { %s1968_s29 = smov 64   ;;  %s1969_s26 = smov 4  }
  0x6d   : > { %1423 = dma.hbm_to_vmem [thread:$0]  (!%p2097_p6), %s2605_s5, 128, %s376_s13, [#allocation13], %s1968_s29, %s1968_s29, %s1969_s26  }
  0x6e   : > { %s1970_s16 = smov [#allocation15]   ;;  %s1971_s14 = smov [#allocation18]  }
  0x6f   : > { %s401_s12 = sshll.u32 %s1970_s16, 4  ;;  %s427_s23 = sshll.u32 %s1971_s14, 4  ;;  %s402_s12 = int_to_ptr.vmem [resolvable:$true] %s401_s12  ;;  %s428_s23 = int_to_ptr.vmem [resolvable:$true] %s427_s23 }
  0x70   : > { %s1633_s20 = scalar_lea.hbm %s2572_s7, 256 }
  0x71   : > { %p1634_p7 = scmp.ne.s32.totalorder %s2572_s7, %s1633_s20  ;;  %p1640_p1 = scmp.lt.u32.totalorder %s1633_s20, %s2572_s7 }
  0x73   : > { %p1636_p9 = pnand %p1634_p7, %p2113_p8 }
  0x75   : > { %p1637_p4 = pneg %p1636_p9 }
  0x77   : > { %p1642_p3 = pnand %p1640_p1, %p1637_p4 }
  0x79   : > { %1645 = shalt.err (!%p1642_p3)
}
  0x7a   : > { %s1646_s13 = scalar_lea.vmem %s402_s12, 256  ;;  %p1654_p13 = scmp.lt.s32.totalorder %s402_s12, %s402_s12 }
  0x7b   : > { %p1647_p10 = scmp.ne.s32.totalorder %s402_s12, %s1646_s13  ;;  %p1655_p0 = scmp.lt.s32.totalorder %s1646_s13, %s1646_s13 }
  0x7d   : > { %p1649_p11 = pnand %p1647_p10, %p2113_p8  ;;  %p1656_p2 = por %p1655_p0, %p1654_p13 }
  0x7f   : > { %p1650_p12 = pneg %p1649_p11 }
  0x81   : > { %p1657_p5 = pnand %p1656_p2, %p1650_p12 }
  0x83   : > { %1660 = shalt.err (!%p1657_p5)
}
  0x84   : > { %s2606_s3 = smov 8   ;;  %s2607_s25 = smov 128  }
  0x85   : > { %1429 = dma.hbm_to_vmem [thread:$0]  (!%p2097_p6), %s2572_s7, 256, %s402_s12, [#allocation16], %s2607_s25, %s2607_s25, %s2606_s3  }
  0x86   : > { %s1661_s11 = scalar_lea.hbm %s2574_s9, 256 }
  0x87   : > { %p1662_p7 = scmp.ne.s32.totalorder %s2574_s9, %s1661_s11  ;;  %p1668_p1 = scmp.lt.u32.totalorder %s1661_s11, %s2574_s9 }
  0x89   : > { %p1664_p9 = pnand %p1662_p7, %p2113_p8 }
  0x8b   : > { %p1665_p4 = pneg %p1664_p9 }
  0x8d   : > { %p1670_p3 = pnand %p1668_p1, %p1665_p4 }
  0x8f   : > { %1673 = shalt.err (!%p1670_p3)
}
  0x90   : > { %s1674_s13 = scalar_lea.vmem %s428_s23, 256  ;;  %p1682_p13 = scmp.lt.s32.totalorder %s428_s23, %s428_s23 }
  0x91   : > { %p1675_p10 = scmp.ne.s32.totalorder %s428_s23, %s1674_s13  ;;  %p1683_p0 = scmp.lt.s32.totalorder %s1674_s13, %s1674_s13 }
  0x93   : > { %p1677_p11 = pnand %p1675_p10, %p2113_p8  ;;  %p1684_p2 = por %p1683_p0, %p1682_p13 }
  0x95   : > { %p1678_p12 = pneg %p1677_p11 }
  0x97   : > { %p1685_p5 = pnand %p1684_p2, %p1678_p12 }
  0x99   : > { %1688 = shalt.err (!%p1685_p5)
}
  0x9a   : > { %1435 = dma.hbm_to_vmem [thread:$0]  (!%p2097_p6), %s2574_s9, 256, %s428_s23, [#allocation19], %s1968_s29, %s1968_s29, %s1969_s26  }
  0x9b   : > { %s1972_s24 = smov [#allocation8]   ;;  %s1973_s1 = smov [#allocation11]  }
  0x9c   : > { %s339_s20 = sshll.u32 %s1972_s24, 4  ;;  %s362_s11 = sshll.u32 %s1973_s1, 4  ;;  %s340_s20 = int_to_ptr.vmem [resolvable:$true] %s339_s20  ;;  %s363_s11 = int_to_ptr.vmem [resolvable:$true] %s362_s11 }
  0x9d   : > { %s1689_s27 = scalar_lea.hbm %s2567_s2, 48 }
  0x9e   : > { %p1690_p7 = scmp.ne.s32.totalorder %s2567_s2, %s1689_s27  ;;  %p1696_p1 = scmp.lt.u32.totalorder %s1689_s27, %s2567_s2 }
  0xa0   : > { %p1692_p9 = pnand %p1690_p7, %p2113_p8 }
  0xa2   : > { %p1693_p4 = pneg %p1692_p9 }
  0xa4   : > { %p1698_p3 = pnand %p1696_p1, %p1693_p4 }
  0xa6   : > { %1701 = shalt.err (!%p1698_p3)
}
  0xa7   : > { %s1702_s29 = scalar_lea.vmem %s340_s20, 48  ;;  %s1709_s26 = scalar_lea.vmem %s340_s20, 64 }
  0xa8   : > { %p1703_p10 = scmp.ne.s32.totalorder %s340_s20, %s1702_s29  ;;  %p1710_p13 = scmp.lt.s32.totalorder %s340_s20, %s340_s20 }
  0xa9   : > { %p1711_p0 = scmp.lt.s32.totalorder %s1709_s26, %s1702_s29 }
  0xaa   : > { %p1705_p11 = pnand %p1703_p10, %p2113_p8 }
  0xab   : > { %p1712_p2 = por %p1711_p0, %p1710_p13 }
  0xac   : > { %p1706_p12 = pneg %p1705_p11 }
  0xae   : > { %p1713_p5 = pnand %p1712_p2, %p1706_p12 }
  0xb0   : > { %1716 = shalt.err (!%p1713_p5)
}
  0xb1   : > { %1414 = dma.hbm_to_vmem [thread:$0]  (!%p2097_p6), %s2567_s2, 48, %s340_s20, [#allocation7]  }
  0xb2   : > { %s1717_s1 = scalar_lea.hbm %s2569_s4, 256 }
  0xb3   : > { %p1718_p7 = scmp.ne.s32.totalorder %s2569_s4, %s1717_s1  ;;  %p1724_p1 = scmp.lt.u32.totalorder %s1717_s1, %s2569_s4 }
  0xb5   : > { %p1720_p9 = pnand %p1718_p7, %p2113_p8 }
  0xb7   : > { %p1721_p4 = pneg %p1720_p9 }
  0xb9   : > { %p1726_p3 = pnand %p1724_p1, %p1721_p4 }
  0xbb   : > { %1729 = shalt.err (!%p1726_p3)
}
  0xbc   : > { %s1730_s13 = scalar_lea.vmem %s363_s11, 256  ;;  %p1738_p13 = scmp.lt.s32.totalorder %s363_s11, %s363_s11 }
  0xbd   : > { %p1731_p10 = scmp.ne.s32.totalorder %s363_s11, %s1730_s13  ;;  %p1739_p0 = scmp.lt.s32.totalorder %s1730_s13, %s1730_s13 }
  0xbf   : > { %p1733_p11 = pnand %p1731_p10, %p2113_p8  ;;  %p1740_p2 = por %p1739_p0, %p1738_p13 }
  0xc1   : > { %p1734_p12 = pneg %p1733_p11 }
  0xc3   : > { %p1741_p5 = pnand %p1740_p2, %p1734_p12 }
  0xc5   : > { %1744 = shalt.err (!%p1741_p5)
}
  0xc6   : > { %1420 = dma.hbm_to_vmem [thread:$0]  (!%p2097_p6), %s2569_s4, 256, %s363_s11, [#allocation10], %s2607_s25, %s2607_s25, %s2606_s3  }
  0xc7   : > { %s1974_s29 = smov [#allocation14]   ;;  %s1975_s23 = smov [#allocation17]  }
  0xc8   : > { %s388_s26 = sshll.u32 %s1974_s29, 4  ;;  %s414_s0 = sshll.u32 %s1975_s23, 4  ;;  %s389_s26 = int_to_ptr.vmem [resolvable:$true] %s388_s26  ;;  %s415_s0 = int_to_ptr.vmem [resolvable:$true] %s414_s0 }
  0xc9   : > { %s1745_s1 = scalar_lea.hbm %s2571_s6, 256 }
  0xca   : > { %p1746_p7 = scmp.ne.s32.totalorder %s2571_s6, %s1745_s1  ;;  %p1752_p1 = scmp.lt.u32.totalorder %s1745_s1, %s2571_s6 }
  0xcc   : > { %p1748_p9 = pnand %p1746_p7, %p2113_p8 }
  0xce   : > { %p1749_p4 = pneg %p1748_p9 }
  0xd0   : > { %p1754_p3 = pnand %p1752_p1, %p1749_p4 }
  0xd2   : > { %1757 = shalt.err (!%p1754_p3)
}
  0xd3   : > { %s1758_s11 = scalar_lea.vmem %s389_s26, 256  ;;  %p1766_p13 = scmp.lt.s32.totalorder %s389_s26, %s389_s26 }
  0xd4   : > { %p1759_p10 = scmp.ne.s32.totalorder %s389_s26, %s1758_s11  ;;  %p1767_p0 = scmp.lt.s32.totalorder %s1758_s11, %s1758_s11 }
  0xd6   : > { %p1761_p11 = pnand %p1759_p10, %p2113_p8  ;;  %p1768_p2 = por %p1767_p0, %p1766_p13 }
  0xd8   : > { %p1762_p12 = pneg %p1761_p11 }
  0xda   : > { %p1769_p5 = pnand %p1768_p2, %p1762_p12 }
  0xdc   : > { %1772 = shalt.err (!%p1769_p5)
}
  0xdd   : > { %1426 = dma.hbm_to_vmem [thread:$0]  (!%p2097_p6), %s2571_s6, 256, %s389_s26, [#allocation13], %s2607_s25, %s2607_s25, %s2606_s3  }
  0xde   : > { %s1773_s23 = scalar_lea.hbm %s2573_s8, 256 }
  0xdf   : > { %p1774_p7 = scmp.ne.s32.totalorder %s2573_s8, %s1773_s23  ;;  %p1780_p1 = scmp.lt.u32.totalorder %s1773_s23, %s2573_s8 }
  0xe1   : > { %p1776_p9 = pnand %p1774_p7, %p2113_p8 }
  0xe3   : > { %p1777_p4 = pneg %p1776_p9 }
  0xe5   : > { %p1782_p3 = pnand %p1780_p1, %p1777_p4 }
  0xe7   : > { %1785 = shalt.err (!%p1782_p3)
}
  0xe8   : > { %s1786_s14 = scalar_lea.vmem %s415_s0, 256  ;;  %p1794_p13 = scmp.lt.s32.totalorder %s415_s0, %s415_s0 }
  0xe9   : > { %p1787_p10 = scmp.ne.s32.totalorder %s415_s0, %s1786_s14  ;;  %p1795_p0 = scmp.lt.s32.totalorder %s1786_s14, %s1786_s14 }
  0xeb   : > { %p1789_p11 = pnand %p1787_p10, %p2113_p8  ;;  %p1796_p2 = por %p1795_p0, %p1794_p13 }
  0xed   : > { %p1790_p12 = pneg %p1789_p11 }
  0xef   : > { %p1797_p5 = pnand %p1796_p2, %p1790_p12 }
  0xf1   : > { %1800 = shalt.err (!%p1797_p5)
}
  0xf2   : > { %1432 = dma.hbm_to_vmem [thread:$0]  (!%p2097_p6), %s2573_s8, 256, %s415_s0, [#allocation16], %s2607_s25, %s2607_s25, %s2606_s3  }
  0xf3   : > { %s1976_s15 = smov [#allocation20]   ;;  %s1801_s12 = scalar_lea.hbm %s2575_s10, 512 }
  0xf4   : > { %s440_s11 = sshll.u32 %s1976_s15, 4  ;;  %p1802_p7 = scmp.ne.s32.totalorder %s2575_s10, %s1801_s12  ;;  %s441_s11 = int_to_ptr.vmem [resolvable:$true] %s440_s11 }
  0xf5   : > { %p1808_p1 = scmp.lt.u32.totalorder %s1801_s12, %s2575_s10 }
  0xf6   : > { %p1804_p9 = pnand %p1802_p7, %p2113_p8 }
  0xf8   : > { %p1805_p4 = pneg %p1804_p9 }
  0xfa   : > { %p1810_p3 = pnand %p1808_p1, %p1805_p4 }
  0xfc   : > { %1813 = shalt.err (!%p1810_p3)
}
  0xfd   : > { %s1814_s0 = scalar_lea.vmem %s441_s11, 512  ;;  %p1822_p13 = scmp.lt.s32.totalorder %s441_s11, %s441_s11 }
  0xfe   : > { %p1815_p10 = scmp.ne.s32.totalorder %s441_s11, %s1814_s0  ;;  %p1823_p0 = scmp.lt.s32.totalorder %s1814_s0, %s1814_s0 }
 0x100   : > { %p1817_p11 = pnand %p1815_p10, %p2113_p8  ;;  %p1824_p2 = por %p1823_p0, %p1822_p13 }
 0x102   : > { %p1818_p12 = pneg %p1817_p11 }
 0x104   : > { %p1825_p5 = pnand %p1824_p2, %p1818_p12 }
 0x106   : > { %1828 = shalt.err (!%p1825_p5)
}
 0x107   : > { %s2608_s28 = sld [smem:[#allocation30_spill]]  ;;  %s1315_s30 = sadd.s32 4294967294, %s1961_s22  }
 0x108   : > { %1438 = dma.hbm_to_vmem [thread:$0]  (!%p2097_p6), %s2575_s10, 512, %s441_s11, [#allocation19], %s2607_s25, %s2607_s25, %s2606_s3  }
 0x109   : > { %s44_s14 = sadd.s32 1, %s1957_s21  ;;  %s53_s26 = sadd.s32 1, %s1949_s19 }
 0x10a   : > { %p46_p8 = scmp.ge.s32.totalorder %s44_s14, 2  ;;  %p60_p7 = scmp.ne.s32.totalorder %s1949_s19, %s1945_s18 }
 0x10b   : > { %p61_p9 = scmp.eq.s32.totalorder %s1961_s22, 0  ;;  %p66_p1 = scmp.ne.s32.totalorder %s1945_s18, %s1941_s17 }
 0x10c   : > { %s2632_s14 = smov (%p46_p8, %s44_s14), 0  ;;  %s2610_s25 = sadd.s32 4294967295, %s1961_s22  }
 0x10d   : > { %p2329_p4 = por %p61_p9, %p60_p7  ;;  %s48_s3 = ssub.s32 %s1957_s21, %s2632_s14 }
 0x10e   : > { %p302_p6 = scmp.eq.s32.totalorder %s2610_s25, 1  ;;  %p51_p3 = scmp.eq.s32.totalorder %s48_s3, 0 }
 0x10f   : > { %p2611_p10 = scmp.ne.s32.totalorder %s2608_s28, 0  ;;  %p308_p13 = scmp.eq.s32.totalorder %s1315_s30, 1 }
 0x110   : > { %p2345_p12 = por %p302_p6, %p60_p7  ;;  %p1457_p2 = scmp.lt.s32.totalorder %s1961_s22, 2 }
 0x111   : > { %p2341_p11 = por %p2611_p10, %p66_p1  ;;  %p2352_p0 = por %p308_p13, %p66_p1 }
 0x112   : > { %s2613_s11 = scalar_select %p2345_p12, 1, 0 }
 0x113   : > { %s2350_s13 = scalar_select %p51_p3, %s1949_s19, %s53_s26  }
 0x114   : > { %s2614_s20 = scalar_select %p2352_p0, 1, 0 }
 0x115   : > { %s454_s12 = sand.u32 1, %s1949_s19   ;;  %s1360_s29 = sshll.u32 %s1957_s21, 9 }
 0x116   : > { %s1328_s23 = sshll.u32 %s454_s12, 5  ;;  %s2615_s0 = sld [smem:[#allocation32_spill]] }
 0x117   : > { %s458_s16 = scalar_lea.vmem [#allocation3], %s1328_s23  ;;  %p2366_p5 = pnand %p1457_p2, %p2329_p4 }
 0x118   : > { %s467_s28 = sshll.u32 %s458_s16, 4  ;;  %s2372_s26 = scalar_lea.sflag [#allocation4], %s454_s12  ;;  %s2370_s28 = int_to_ptr.vmem [resolvable:$true] %s467_s28 }
 0x119   : > { %p1831_p7 = pneg %p2366_p5 }
 0x11c   : > { %s2362_s1 = scalar_lea.hbm %s2615_s0, %s1360_s29  ;;  %s1834_s29 = scalar_lea.hbm %s2615_s0, 1024 }
 0x11d   : > { %s1829_s3 = scalar_lea.hbm %s2362_s1, 512  ;;  %p1835_p4 = scmp.lt.u32.totalorder %s2362_s1, %s2615_s0 }
 0x11e   : > { %p1830_p8 = scmp.ne.s32.totalorder %s2362_s1, %s1829_s3  ;;  %p1836_p6 = scmp.lt.u32.totalorder %s1834_s29, %s1829_s3 }
 0x11f   : > { %p1838_p10 = scmp.lt.u32.totalorder %s1829_s3, %s2362_s1 }
 0x120   : > { %p1832_p9 = pnand %p1831_p7, %p1830_p8  ;;  %p1837_p3 = por %p1836_p6, %p1835_p4 }
 0x122   : > { %p1833_p1 = pneg %p1832_p9  ;;  %p1839_p13 = por %p1838_p10, %p1837_p3 }
 0x124   : > { %p1840_p2 = pnand %p1839_p13, %p1833_p1 }
 0x126   : > { %1843 = shalt.err (!%p1840_p2)
}
 0x127   : > { %s1844_s12 = scalar_lea.vmem %s2370_s28, 512  ;;  %s1977_s24 = smov [#allocation3]  }
 0x128   : > { %p1845_p8 = scmp.ne.s32.totalorder %s2370_s28, %s1844_s12  ;;  %s1849_s16 = sshll.u32 %s1977_s24, 4  ;;  %s1850_s16 = int_to_ptr.vmem [resolvable:$false] %s1849_s16 }
 0x129   : > { %s1851_s25 = scalar_lea.vmem %s1850_s16, 1024  ;;  %p1852_p12 = scmp.lt.s32.totalorder %s2370_s28, %s1850_s16 }
 0x12a   : > { %p1847_p9 = pnand %p1845_p8, %p1831_p7  ;;  %p1853_p4 = scmp.lt.s32.totalorder %s1851_s25, %s1844_s12 }
 0x12c   : > { %p1848_p0 = pneg %p1847_p9  ;;  %p1854_p6 = por %p1853_p4, %p1852_p12 }
 0x12e   : > { %p1855_p3 = pnand %p1854_p6, %p1848_p0 }
 0x130   : > { %1858 = shalt.err (!%p1855_p3)
}
 0x131   : > { %s1978_s3 = smov 256   ;;  %s1979_s27 = smov 16  }
 0x132   : > { %1442 = dma.hbm_to_vmem [thread:$0]  (!%p2366_p5), %s2362_s1, 512, %s2370_s28, %s2372_s26, %s1978_s3, %s1978_s3, %s1979_s27  }
 0x133   : > { %s2617_s29 = sld [smem:[#allocation31_spill]] }
 0x139   : > { %p2618_p7 = scmp.ne.s32.totalorder %s2617_s29, 0 }
 0x13a   : > { %s2403_s23 = sand.u32 (!%p2618_p7), 1, %s1945_s18  }
 0x13b   : > { %479 = sbr.rel (%p2618_p7) target bundleno = 1564 (0x61c), region = 64  ;;  %s1332_s5 = sshll.u32 (!%p2618_p7), %s2403_s23, 5 }
 0x13c   : > { %s482_s12 = scalar_lea.sflag (!%p2618_p7), [#allocation4], %s2403_s23  ;;  %s2407_s24 = scalar_lea.vmem (!%p2618_p7), [#allocation3], %s1332_s5 }
 0x142   : > { %1912 = dma.done.wait (%p2341_p11), %s482_s12, 512  }
 0x143   : > { %1914 = vsyncadd (%p2341_p11), %s482_s12, 4294966784  ;;  %s2619_s30 = sld [smem:[#allocation30_spill]] }
 0x149   : > { %p2620_p12 = scmp.ne.s32.totalorder %s2619_s30, 0 }
 0x14b   : > { %1916 = dma.done.wait (%p2620_p12), [#allocation7], 96  }
 0x14c   : > { %1918 = vsyncadd (%p2620_p12), [#allocation7], 4294967200 }
 0x14d   : > { %1920 = dma.done.wait (%p2620_p12), [#allocation10], 512  }
 0x14e   : > { %1922 = vsyncadd (%p2620_p12), [#allocation10], 4294966784 }
 0x14f   : > { %1924 = dma.done.wait (%p2620_p12), [#allocation13], 384  }
 0x150   : > { %1926 = vsyncadd (%p2620_p12), [#allocation13], 4294966912 }
 0x151   : > { %1928 = dma.done.wait (%p2620_p12), [#allocation16], 512  }
 0x152   : > { %1930 = vsyncadd (%p2620_p12), [#allocation16], 4294966784 }
 0x153   : > { %1932 = dma.done.wait (%p2620_p12), [#allocation19], 768  }
 0x154   : > { %1934 = vsyncadd (%p2620_p12), [#allocation19], 4294966528  ;;  %v1980_v0 = vmov 0   ;;  %v587_v1 = vld [vmem:[#allocation11] sm:$0xff]  ;;  %v571_v2 = vld [vmem:[#allocation9] sm:$0xff]  ;;  %vm628_vm0 = vcmask 130048   ;;  %v729_v54 = vlaneseq }
 0x155   : > { %1542 = vset.pattern.permute.xlu1 %v1980_v0  ;;  %1541 = vset.pattern.permute.xlu0 %v1980_v0  ;;  %v588_v3 = vld [vmem:[#allocation11 + $0x8] sm:$0xff]  ;;  %v572_v4 = vld [vmem:[#allocation9 + $0x8] sm:$0xff]  ;;  %v612_v5 = vld [vmem:[#allocation14 + $0x8] sm:$0xff]  ;;  %s1981_s15 = smov 16   ;;  %vm696_vm1 = vcmask 261120   ;;  %s1982_s1 = smov 1  }
 0x156   : > { %664 = vmatprep.mubr.bf16.mxu0 %v1980_v0  ;;  %591 = vperm.xlu1 %1542, %v587_v1   ;;  %v611_v6 = vld [vmem:[#allocation14] sm:$0xff]  ;;  %v2437_v7 = vld [vmem:[%s2407_s24] sm:$0xff]  ;;  %v2440_v8 = vld [vmem:[%s2407_s24 + $0x8] sm:$0xff]  ;;  %s1983_s28 = smov 127   ;;  %s1984_s26 = smov 112   ;;  %v730_v56 = vshrl.u32 %v729_v54, 7 }
 0x157   : > { %575 = vperm.xlu0 %1541, %v571_v2   ;;  %v2445_v13 = vld [vmem:[%s2407_s24 + $0x10] sm:$0xff]  ;;  %v2448_v14 = vld [vmem:[%s2407_s24 + $0x18] sm:$0xff]  ;;  %v1543_v29 = vld [vmem:[#allocation12] sm:$0xff]   ;;  %v1985_v52 = vmov 1966171168   ;;  %vm706_vm2 = vcmask 7168  }
 0x158   : > { %v727_v53 = vunpack.c.l.s4 %v1985_v52  ;;  %v1346_v58 = vld.sshfl [vmem:[#allocation6] sm:$0x13 pattern:$0x75316420]  ;;  %vm771_vm3 = vcmask 1039360   ;;  %vm1362_vm4 = vmneg %vm628_vm0  ;;  %s1986_s16 = smov 96  }
 0x159   : > { %v725_v59 = vcombine.high %v1346_v58, %v1346_v58  ;;  %v1347_v63 = vld.sshfl [vmem:[#allocation8] sm:$0x13 pattern:$0x75316420]  ;;  %vm845_vm5 = vcmask 916480   ;;  %vm885_vm6 = vcmask 785408  }
 0x15a   : > { %596 = vperm.xlu1 %1542, %v588_v3   ;;  %v728_v55 = vunpack.c.0.s8 %v727_v53  ;;  %v790_v1 = vcombine.high %v1347_v63, %v1347_v63  ;;  %s1343_s25 = sshll.u32 %s2403_s23, 6  ;;  %s2621_s3 = sld [smem:[#allocation29_spill]] }
 0x15b   : > { %580 = vperm.xlu0 %1541, %v572_v4   ;;  %s563_s27 = scalar_lea.vmem [#allocation21], %s1343_s25  ;;  %s2622_s30 = sld [smem:[#allocation36_spill]] }
 0x15c   : > { %v731_v57 = vsub.s32 %v728_v55, %v730_v56  ;;  %s1132_s29 = sshll.u32 %s563_s27, 4  ;;  %p2623_p0 = scmp.ne.s32.totalorder %s2613_s11, 0  ;;  %s2510_s29 = int_to_ptr.vmem [resolvable:$true] %s1132_s29 }
 0x15e   : > { %620 = vperm.xlu1 %1542, %v612_v5   ;;  %v732_v60 = vrot.slane %v1346_v58, %v731_v57  ;;  %v739_v61 = vrot.slane %v725_v59, %v731_v57  ;;  %v797_v5 = vrot.slane %v1347_v63, %v731_v57 }
 0x15f   : > { %615 = vperm.xlu0 %1541, %v611_v6  }
 0x160   : > { %v740_v62 = vcombine.high %v732_v60, %v732_v60  ;;  %v749_v3 = vpack.i.b16 %v739_v61, %v739_v61  ;;  %v742_v6 = vpack.i.b16 %v732_v60, %v732_v60  ;;  %s1361_s5 = sshll.u32 %s2621_s3, 10 }
 0x162   : > { %v756_v4 = vpack.i.b16 %v740_v62, %v740_v62 }
 0x1d5   : > { %v592_v9 = vpop.permute.xlu1 %591 }
 0x1d6   : > { %v576_v10 = vpop.permute.xlu0 %575 }
 0x1d7   : > { %v583_v11 = vmul.f32 %v576_v10, %v2437_v7  ;;  %v584_v12 = vmul.f32 %v576_v10, %v2440_v8 }
 0x1d9   : > { %v599_v16 = vadd.f32 %v592_v9, %v583_v11  ;;  %v600_v19 = vadd.f32 %v592_v9, %v584_v12  ;;  %v597_v20 = vpop.permute.xlu1 %596  ;;  %v746_v9 = vsub.s32 0, %v730_v56  ;;  %v804_v11 = vrot.slane %v790_v1, %v731_v57 }
 0x1da   : > { %v581_v15 = vpop.permute.xlu0 %580 }
 0x1db   : > { %v585_v17 = vmul.f32 %v581_v15, %v2445_v13  ;;  %v586_v18 = vmul.f32 %v581_v15, %v2448_v14  ;;  %v604_v23 = vmax.f32 %v600_v19, 0.0  ;;  %v603_v25 = vmax.f32 %v599_v16, 0.0 }
 0x1dc   : > { %v754_v15 = vrot.slane %v749_v3, %v746_v9  ;;  %v761_v16 = vrot.slane %v756_v4, %v746_v9  ;;  %v747_v19 = vrot.slane %v742_v6, %v746_v9 }
 0x1dd   : > { %v601_v21 = vadd.f32 %v597_v20, %v585_v17  ;;  %v602_v22 = vadd.f32 %v597_v20, %v586_v18  ;;  %v621_v34 = vpop.permute.xlu1 %620  ;;  %v805_v17 = vcombine.high %v797_v5, %v797_v5  ;;  %v807_v18 = vpack.i.b16 %v797_v5, %v797_v5 }
 0x1de   : > { %v616_v30 = vpop.permute.xlu0 %615 }
 0x1df   : > { %v606_v24 = vmax.f32 %v602_v22, 0.0  ;;  %v605_v26 = vmax.f32 %v601_v21, 0.0 }
 0x1e1   : > { %v610_v27 = vpack.c.bf16 %v606_v24, %v604_v23  ;;  %v609_v28 = vpack.c.bf16 %v605_v26, %v603_v25  ;;  %v814_v24 = vpack.i.b16 %v804_v11, %v804_v11 }
 0x1e3   : > { %632 = vmatprep.subr.bf16.mxu0 %v610_v27  ;;  %v821_v27 = vpack.i.b16 %v805_v17, %v805_v17 }
 0x1e4   : > { %633 = vmatpush1.bf16.msra.mxu0 %v609_v28  ;;  %v812_v28 = vrot.slane %v807_v18, %v746_v9  ;;  %v1544_v18 = vld [vmem:[#allocation15] ss:$8 sps:$4 sm:$0xff]  }
 0x1e7   : > { %1345 = vmatmul.mubr.msk.bf16.vlgmr.msra.gmra.mrb[0].mxu0 %vm628_vm0, %v1543_v29 }
 0x1e8   : > { %1087 = vmatprep.mubr.bf16.mxu0 %v1980_v0 }
 0x2ba   : > { %v666_v31 = vpop.f32.mrb[0].mxu0 }
 0x2bb   : > { %v667_v32 = vadd.f32 %v666_v31, %v616_v30  ;;  %v668_v33 = vpop.f32.mrb[1].mxu0 }
 0x2bc   : > { %v669_v35 = vadd.f32 %v668_v33, %v616_v30  ;;  %v670_v36 = vpop.f32.mrb[2].mxu0 }
 0x2bd   : > { %v671_v37 = vadd.f32 %v670_v36, %v621_v34  ;;  %v672_v38 = vpop.f32.mrb[3].mxu0  ;;  %v675_v40 = vmax.f32 %v667_v32, 0.0  ;;  %v819_v32 = vrot.slane %v814_v24, %v746_v9 }
 0x2be   : > { %v673_v39 = vadd.f32 %v672_v38, %v621_v34  ;;  %v676_v42 = vmax.f32 %v669_v35, 0.0  ;;  %v826_v34 = vrot.slane %v821_v27, %v746_v9 }
 0x2bf   : > { %v677_v41 = vmax.f32 %v671_v37, 0.0 }
 0x2c0   : > { %v678_v43 = vmax.f32 %v673_v39, 0.0 }
 0x2c1   : > { %v679_v44 = vpack.c.bf16 %v677_v41, %v675_v40  ;;  %v1546_v40 = vld [vmem:[#allocation15 + $0x4] ss:$8 sps:$4 sm:$0xff]   ;;  %v937_v41 = vld [vmem:[#allocation17 + $0x8] sm:$0xff] }
 0x2c2   : > { %v680_v45 = vpack.c.bf16 %v678_v43, %v676_v42  ;;  %1350 = vmatprep.mubr.msk.bf16.mxu1 %vm628_vm0, %v1546_v40  ;;  %v1016_v42 = vld [vmem:[#allocation20 + $0x8] sm:$0xff]  ;;  %v936_v43 = vld [vmem:[#allocation17] sm:$0xff] }
 0x2c3   : > { %683 = vrot.lane.b32.xlu1 %v679_v44, %s1981_s15  ;;  %v1018_v44 = vld [vmem:[#allocation20 + $0x18] sm:$0xff] }
 0x2c4   : > { %685 = vrot.lane.b32.xlu0 %v680_v45, %s1981_s15  ;;  %v1015_v45 = vld [vmem:[#allocation20] sm:$0xff] }
 0x335   : > { %v2456_v46 = vpop.permute.xlu1 %683 }
 0x336   : > { %v686_v47 = vpop.permute.xlu0 %685  ;;  %v2460_v48 = vsel %vm628_vm0, 0, %v2456_v46 }
 0x337   : > { %v695_v49 = vsel %vm628_vm0, %v686_v47, 0  ;;  %702 = vrot.lane.b32.xlu1 %v2460_v48, %s1982_s1  ;;  %v2471_v51 = vsel %vm628_vm0, %v2456_v46, %v686_v47 }
 0x338   : > { %v2465_v50 = vsel %vm696_vm1, %v695_v49, 0 }
 0x339   : > { %699 = vrot.lane.b32.xlu0 %v2465_v50, %s1982_s1 }
 0x33b   : > { %765 = vrot.lane.b32.xlu1 %v2460_v48, %s1983_s28 }
 0x33d   : > { %704 = vrot.lane.b32.xlu0 %v2471_v51, %s1982_s1  ;;  %s2515_s1 = scalar_lea.hbm %s2622_s30, %s1361_s5 }
 0x33f   : > { %769 = vrot.lane.b32.xlu1 %v2465_v50, %s1983_s28 }
 0x341   : > { %767 = vrot.lane.b32.xlu0 %v2471_v51, %s1983_s28  ;;  %s1117_s28 = scalar_lea.sflag [#allocation5], %s2403_s23 }
 0x343   : > { %854 = vrot.lane.b32.xlu1 %v2471_v51, %s1984_s26 }
 0x345   : > { %856 = vrot.lane.b32.xlu0 %v2465_v50, %s1984_s26 }
 0x347   : > { %852 = vrot.lane.b32.xlu1 %v2460_v48, %s1984_s26 }
 0x3a9   : > { %v703_v2 = vpop.permute.xlu1 %702 }
 0x3ab   : > { %v700_v10 = vpop.permute.xlu0 %699 }
 0x3ac   : > { %v714_v21 = vsel %vm706_vm2, %v700_v10, %v703_v2 }
 0x3ad   : > { %v766_v12 = vpop.permute.xlu1 %765  ;;  %v762_v29 = vmul.bf16 %v747_v19, %v714_v21 }
 0x3af   : > { %v705_v20 = vpop.permute.xlu0 %704 }
 0x3b0   : > { %v707_v22 = vsel %vm706_vm2, %v703_v2, %v705_v20  ;;  %v708_v23 = vsel %vm706_vm2, %v705_v20, %v700_v10 }
 0x3b1   : > { %v763_v25 = vmul.bf16 %v754_v15, %v707_v22  ;;  %v764_v26 = vmul.bf16 %v761_v16, %v708_v23  ;;  %v770_v30 = vpop.permute.xlu1 %769 }
 0x3b2   : > { %v779_v37 = vsel %vm771_vm3, %v770_v30, %v766_v12 }
 0x3b3   : > { %843 = vrot.lane.b32.xlu1 %v764_v26, %s1984_s26  ;;  %841 = vrot.lane.b32.xlu0 %v763_v25, %s1984_s26  ;;  %v768_v31 = vpop.permute.xlu0 %767  ;;  %v829_v39 = vmul.bf16 %v826_v34, %v779_v37  ;;  %v1010_v34 = vpack.c.bf16 %v2448_v14, %v2440_v8  ;;  %v1547_v37 = vld [vmem:[#allocation18] sm:$0xff]  }
 0x3b4   : > { %960 = vmatprep.subr.bf16.mxu1 %v763_v25  ;;  %v772_v33 = vsel %vm771_vm3, %v766_v12, %v768_v31  ;;  %v773_v35 = vsel %vm771_vm3, %v768_v31, %v770_v30 }
 0x3b5   : > { %v827_v36 = vmul.bf16 %v812_v28, %v772_v33  ;;  %961 = vmatpush1.bf16.msra.mxu1 %v762_v29  ;;  %v828_v38 = vmul.bf16 %v819_v32, %v773_v35  ;;  %v855_v47 = vpop.permute.xlu1 %854 }
 0x3b6   : > { %962 = vmatprep.subr.bf16.mxu1 %v2471_v51 }
 0x3b7   : > { %881 = vrot.lane.b32.xlu1 %v763_v25, %s1986_s16  ;;  %867 = vrot.lane.b32.xlu0 %v827_v36, %s1984_s26  ;;  %v857_v49 = vpop.permute.xlu0 %856 }
 0x3b8   : > { %v859_v58 = vsel %vm845_vm5, %v855_v47, %v857_v49 }
 0x3b9   : > { %1363 = vmatpush1.bf16.msk.msra.mxu1 %vm1362_vm4, %v2456_v46  ;;  %v1017_v46 = vld [vmem:[#allocation20 + $0x10] sm:$0xff] }
 0x3ba   : > { %964 = vmatprep.subr.bf16.mxu1 %v828_v38 }
 0x3bb   : > { %871 = vrot.lane.b32.xlu1 %v829_v39, %s1984_s26  ;;  %839 = vrot.lane.b32.xlu0 %v762_v29, %s1984_s26 }
 0x3bd   : > { %965 = vmatpush1.bf16.msra.mxu1 %v827_v36 }
 0x3bf   : > { %896 = vrot.lane.b32.xlu1 %v2465_v50, %s1986_s16  ;;  %894 = vrot.lane.b32.xlu0 %v2471_v51, %s1986_s16  ;;  %v853_v50 = vpop.permute.xlu1 %852 }
 0x3c0   : > { %v858_v61 = vsel %vm845_vm5, %v853_v50, %v855_v47 }
 0x3c3   : > { %879 = vrot.lane.b32.xlu1 %v762_v29, %s1986_s16  ;;  %869 = vrot.lane.b32.xlu0 %v828_v38, %s1984_s26  ;;  %s1859_s26 = scalar_lea.vmem %s2510_s29, 1024 }
 0x3c4   : > { %p1860_p11 = scmp.ne.s32.totalorder %s2510_s29, %s1859_s26 }
 0x3c6   : > { %p1861_p5 = pnand %p1860_p11, %p2623_p0 }
 0x3c7   : > { %906 = vrot.lane.b32.xlu1 %v828_v38, %s1986_s16  ;;  %883 = vrot.lane.b32.xlu0 %v764_v26, %s1986_s16  ;;  %v1548_v38 = vld [vmem:[#allocation18 + $0x8] sm:$0xff]  }
 0x3c8   : > { %p1862_p1 = pneg %p1861_p5 }
 0x3cb   : > { %904 = vrot.lane.b32.xlu1 %v827_v36, %s1986_s16  ;;  %892 = vrot.lane.b32.xlu0 %v2460_v48, %s1986_s16  ;;  %v1009_v36 = vpack.c.bf16 %v2445_v13, %v2437_v7 }
 0x3cf   : > { %945 = vperm.xlu1 %1542, %v937_v41   ;;  %908 = vrot.lane.b32.xlu0 %v829_v39, %s1986_s16  ;;  %s1987_s16 = smov [#allocation21]  }
 0x3d0   : > { %s1863_s25 = sshll.u32 %s1987_s16, 4  ;;  %s1864_s25 = int_to_ptr.vmem [resolvable:$false] %s1863_s25 }
 0x3d1   : > { %s1865_s3 = scalar_lea.vmem %s1864_s25, 2048  ;;  %p1866_p10 = scmp.lt.s32.totalorder %s2510_s29, %s1864_s25 }
 0x3d2   : > { %p1867_p13 = scmp.lt.s32.totalorder %s1865_s3, %s1859_s26 }
 0x3d3   : > { %1026 = vperm.xlu1 %1542, %v1016_v42   ;;  %940 = vperm.xlu0 %1541, %v936_v43  }
 0x3d4   : > { %p1868_p2 = por %p1867_p13, %p1866_p10 }
 0x3d6   : > { %p1869_p8 = pnand %p1868_p2, %p1862_p1 }
 0x3d7   : > { %1036 = vperm.xlu1 %1542, %v1018_v44   ;;  %1021 = vperm.xlu0 %1541, %v1015_v45  }
 0x3db   : > { %1031 = vperm.xlu0 %1541, %v1017_v46  }
 0x425   : > { %v844_v51 = vpop.permute.xlu1 %843  ;;  %v842_v52 = vpop.permute.xlu0 %841 }
 0x426   : > { %v847_v48 = vsel %vm845_vm5, %v842_v52, %v844_v51 }
 0x427   : > { %966 = vmatprep.subr.bf16.mxu1 %v847_v48 }
 0x429   : > { %v882_v53 = vpop.permute.xlu1 %881  ;;  %v868_v54 = vpop.permute.xlu0 %867 }
 0x42d   : > { %v872_v55 = vpop.permute.xlu1 %871  ;;  %v840_v56 = vpop.permute.xlu0 %839 }
 0x42e   : > { %v846_v57 = vsel %vm845_vm5, %v840_v56, %v842_v52 }
 0x42f   : > { %967 = vmatpush1.bf16.msra.mxu1 %v846_v57 }
 0x430   : > { %968 = vmatprep.subr.bf16.mxu1 %v859_v58 }
 0x431   : > { %v897_v59 = vpop.permute.xlu1 %896  ;;  %v895_v60 = vpop.permute.xlu0 %894 }
 0x432   : > { %v899_v9 = vsel %vm885_vm6, %v895_v60, %v897_v59 }
 0x433   : > { %969 = vmatpush1.bf16.msra.mxu1 %v858_v61 }
 0x435   : > { %v880_v62 = vpop.permute.xlu1 %879  ;;  %v870_v63 = vpop.permute.xlu0 %869 }
 0x436   : > { %v874_v1 = vsel %vm845_vm5, %v870_v63, %v872_v55  ;;  %v873_v2 = vsel %vm845_vm5, %v868_v54, %v870_v63  ;;  %v886_v6 = vsel %vm885_vm6, %v880_v62, %v882_v53 }
 0x437   : > { %970 = vmatprep.subr.bf16.mxu1 %v874_v1 }
 0x438   : > { %971 = vmatpush1.bf16.msra.mxu1 %v873_v2 }
 0x439   : > { %v884_v3 = vpop.permute.xlu0 %883  ;;  %v907_v4 = vpop.permute.xlu1 %906 }
 0x43a   : > { %v887_v5 = vsel %vm885_vm6, %v882_v53, %v884_v3 }
 0x43b   : > { %972 = vmatprep.subr.bf16.mxu1 %v887_v5 }
 0x43c   : > { %973 = vmatpush1.bf16.msra.mxu1 %v886_v6 }
 0x43d   : > { %974 = vmatprep.subr.bf16.mxu1 %v899_v9  ;;  %v893_v10 = vpop.permute.xlu0 %892  ;;  %v905_v12 = vpop.permute.xlu1 %904 }
 0x43e   : > { %v898_v11 = vsel %vm885_vm6, %v893_v10, %v895_v60  ;;  %v910_v17 = vsel %vm885_vm6, %v905_v12, %v907_v4 }
 0x440   : > { %975 = vmatpush1.bf16.msra.mxu1 %v898_v11 }
 0x441   : > { %v909_v15 = vpop.permute.xlu0 %908 }
 0x442   : > { %v911_v16 = vsel %vm885_vm6, %v907_v4, %v909_v15 }
 0x443   : > { %976 = vmatprep.subr.bf16.mxu1 %v911_v16 }
 0x444   : > { %977 = vmatpush1.bf16.msra.mxu1 %v910_v17 }
 0x447   : > { %993 = vmatmul.mubr.bf16.vlgmr.msra.gmra.mrb[0].mxu1 %v1544_v18 }
 0x44e   : > { %v946_v23 = vpop.permute.xlu1 %945 }
 0x452   : > { %v941_v19 = vpop.permute.xlu0 %940  ;;  %v1027_v41 = vpop.permute.xlu1 %1026 }
 0x456   : > { %v1022_v39 = vpop.permute.xlu0 %1021  ;;  %v1037_v49 = vpop.permute.xlu1 %1036 }
 0x51a   : > { %v994_v20 = vpop.f32.mrb[0].mxu1 }
 0x51b   : > { %v995_v21 = vadd.f32 %v994_v20, %v941_v19  ;;  %v996_v22 = vpop.f32.mrb[1].mxu1 }
 0x51c   : > { %v997_v24 = vadd.f32 %v996_v22, %v941_v19  ;;  %v998_v25 = vpop.f32.mrb[2].mxu1 }
 0x51d   : > { %v999_v26 = vadd.f32 %v998_v25, %v946_v23  ;;  %v1000_v27 = vpop.f32.mrb[3].mxu1  ;;  %v1003_v29 = vmax.f32 %v995_v21, 0.0 }
 0x51e   : > { %v1001_v28 = vadd.f32 %v1000_v27, %v946_v23  ;;  %v1004_v31 = vmax.f32 %v997_v24, 0.0 }
 0x51f   : > { %v1005_v30 = vmax.f32 %v999_v26, 0.0 }
 0x520   : > { %v1006_v32 = vmax.f32 %v1001_v28, 0.0 }
 0x521   : > { %v1007_v33 = vpack.c.bf16 %v1005_v30, %v1003_v29 }
 0x522   : > { %v1008_v35 = vpack.c.bf16 %v1006_v32, %v1004_v31 }
 0x524   : > { %1055 = vmatprep.subr.bf16.mxu0 %v1008_v35 }
 0x525   : > { %1056 = vmatpush1.bf16.msra.mxu0 %v1007_v33 }
 0x526   : > { %1057 = vmatprep.subr.bf16.mxu0 %v1010_v34 }
 0x529   : > { %1058 = vmatpush1.bf16.msra.mxu0 %v1009_v36 }
 0x52c   : > { %1353 = vmatmul.mubr.msk.bf16.vlgmr.msra.gmra.mrb[4].mxu0 %vm696_vm1, %v1547_v37 }
 0x52d   : > { %1097 = vmatprep.mubr.bf16.mxu0 %v1980_v0  ;;  %v1032_v0 = vpop.permute.xlu0 %1031 }
 0x534   : > { %1354 = vmatmul.mubr.msk.bf16.gmra.mrb[8].mxu0 %vm696_vm1, %v1548_v38 }
 0x5ff   : > { %v1089_v40 = vpop.f32.mrb[4].mxu0 }
 0x600   : > { %v1090_v8 = vadd.f32 %v1089_v40, %v1022_v39  ;;  %v1091_v14 = vpop.f32.mrb[5].mxu0 }
 0x601   : > { %v1092_v42 = vadd.f32 %v1091_v14, %v1022_v39  ;;  %v1093_v7 = vpop.f32.mrb[6].mxu0 }
 0x602   : > { %1108 = vst [vmem:[%s563_s27] sm:$0xff] %v1090_v8  ;;  %v1094_v13 = vadd.f32 %v1093_v7, %v1027_v41  ;;  %v1095_v43 = vpop.f32.mrb[7].mxu0 }
 0x603   : > { %1109 = vst [vmem:[%s563_s27 + $0x8] sm:$0xff] %v1092_v42  ;;  %v1096_v44 = vadd.f32 %v1095_v43, %v1027_v41 }
 0x604   : > { %1110 = vst [vmem:[%s563_s27 + $0x10] sm:$0xff] %v1094_v13 }
 0x605   : > { %1111 = vst [vmem:[%s563_s27 + $0x18] sm:$0xff] %v1096_v44 }
 0x607   : > { %v1099_v45 = vpop.f32.mrb[8].mxu0 }
 0x608   : > { %v1100_v46 = vadd.f32 %v1099_v45, %v1032_v0  ;;  %v1101_v47 = vpop.f32.mrb[9].mxu0 }
 0x609   : > { %v1102_v50 = vadd.f32 %v1101_v47, %v1032_v0  ;;  %v1103_v51 = vpop.f32.mrb[10].mxu0 }
 0x60a   : > { %1112 = vst [vmem:[%s563_s27 + $0x20] sm:$0xff] %v1100_v46  ;;  %v1104_v52 = vadd.f32 %v1103_v51, %v1037_v49  ;;  %v1105_v48 = vpop.f32.mrb[11].mxu0 }
 0x60b   : > { %1113 = vst [vmem:[%s563_s27 + $0x28] sm:$0xff] %v1102_v50  ;;  %v1106_v53 = vadd.f32 %v1105_v48, %v1037_v49 }
 0x60c   : > { %1114 = vst [vmem:[%s563_s27 + $0x30] sm:$0xff] %v1104_v52 }
 0x60d   : > { %1115 = vst [vmem:[%s563_s27 + $0x38] sm:$0xff] %v1106_v53 }
 0x60e   : > { %1872 = shalt.err (!%p1869_p8)
}
 0x60f   : > { %s1873_s27 = scalar_lea.hbm %s2515_s1, 1024  ;;  %s1877_s24 = scalar_lea.hbm %s2622_s30, 2048 }
 0x610   : > { %p1874_p9 = scmp.ne.s32.totalorder %s2515_s1, %s1873_s27  ;;  %p1878_p3 = scmp.lt.u32.totalorder %s2515_s1, %s2622_s30 }
 0x611   : > { %p1879_p7 = scmp.lt.u32.totalorder %s1877_s24, %s1873_s27  ;;  %p1881_p11 = scmp.lt.u32.totalorder %s1873_s27, %s2515_s1 }
 0x612   : > { %p1875_p4 = pnand %p1874_p9, %p2623_p0 }
 0x613   : > { %p1880_p12 = por %p1879_p7, %p1878_p3 }
 0x614   : > { %p1876_p6 = pneg %p1875_p4 }
 0x615   : > { %p1882_p5 = por %p1881_p11, %p1880_p12 }
 0x617   : > { %p1883_p1 = pnand %p1882_p5, %p1876_p6 }
 0x619   : > { %1886 = shalt.err (!%p1883_p1)
}
 0x61a   : > { %s1988_s26 = smov 256  }
 0x61b   : > { %1406 = dma.vmem_to_hbm [thread:$0]  (%p2623_p0), %s2510_s29, 1024, %s2515_s1, %s1117_s28, %s1988_s26, %s1988_s26, %s1981_s15  }
 0x61c PF: > { %s1147_s3 = sand.u32 1, %s1941_s17   ;;  %p2624_p10 = scmp.ne.s32.totalorder %s2614_s20, 0 }
 0x61d   : > { %p2625_p13 = scmp.ge.s32.totalorder %s1961_s22, 2  ;;  %s1148_s27 = scalar_lea.sflag [#allocation5], %s1147_s3 }
 0x61f   : > { %p1444_p2 = pnand %p2625_p13, %p2624_p10 }
 0x621   : > { %1936 = dma.done.wait (!%p1444_p2), %s1148_s27, 1024  }
 0x622   : > { %1938 = vsyncadd (!%p1444_p2), %s1148_s27, 4294966272  ;;  %s32_s22 = sadd.s32 1, %s1961_s22   ;;  %s2626_s17 = smov %s1945_s18 }
 0x623   : > { %p29_p8 = scmp.ge.s32.totalorder %s32_s22, 4   ;;  %s2627_s18 = smov %s1949_s19 }
 0x624   : > { %s2628_s19 = smov %s2350_s13  ;;  %s2629_s20 = smov %s1957_s21 }
 0x625   : > { %s2630_s21 = smov %s2632_s14  ;;  %31 = sbr.rel (!%p29_p8) target bundleno = 17 (0x11), region = 149 }
 0x62c   :  { %1153 = vsyncpa [#allocation4], 1 }
 0x62d   :  { %1155 = vsyncpa [#allocation4 + $0x1], 1 }
 0x62e   :  { %1156 = vsyncpa [#allocation7], 1 }
 0x62f   :  { %1157 = vsyncpa [#allocation10], 1 }
 0x630   :  { %1158 = vsyncpa [#allocation13], 1 }
 0x631   :  { %1159 = vsyncpa [#allocation16], 1 }
 0x632   :  { %1160 = vsyncpa [#allocation19], 1 }
 0x633   :  { %1161 = vsyncpa [#allocation5], 1 }
 0x634   :  { %1163 = vsyncpa [#allocation5 + $0x1], 1 }

</bundles_post_ra>
